<compile_context>
chip_gen: v5e
topology: v5e:2x2
jax: 0.10.0
libtpu: 0.0.40
codegen_flags: <defaults>
</compile_context>

<pallas_src>
import functools
import math
from typing import NamedTuple

import jax
import jax.numpy as jnp
from jax import lax
from jax.experimental import pallas as pl
from jax.experimental.pallas import tpu as pltpu

NUM_LAYERS = 3      # QNet(num_layers=3, ...)
INPUT_DIM = 4       # CartPole-v0 observation dim
HIDDEN_DIM = 128
OUTPUT_DIM = 2      # CartPole-v0 action dim
BATCH = 8

LANE = 128
SUBLANE_BF16 = 16   # bf16 packs 16 rows per vreg
MAX_TB = 128        # do not raise: (256,128) f32 h + temps overflows the 64-vreg file


def _round_up(n, m):
    return ((n + m - 1) // m) * m


def _pad2d(a, rows, cols):
    return jnp.pad(a, ((0, rows - a.shape[0]), (0, cols - a.shape[1])))


def _gelu_exact(x):
    # matches torch.nn.GELU() default (erf formulation, not tanh approximation)
    return 0.5 * x * (1.0 + lax.erf(x * (1.0 / math.sqrt(2.0))))


def _pick_act_dtype():
    """bf16 bias-add/GELU on chips with a bf16 VPU/EUP (v6e, v7x); f32 otherwise."""
    try:
        kind = jax.devices()[0].device_kind.lower()
    except Exception:
        return jnp.float32
    if ("v6" in kind) or ("v7" in kind) or ("7x" in kind):
        return jnp.bfloat16
    return jnp.float32


def _pick_tb(batch):
    """Adaptive batch tile: smallest bf16-sublane-aligned tile covering the batch,
    capped at 128 (fills MXU rows; grid > 1 at large B -> megacore 'parallel')."""
    return min(MAX_TB, _round_up(batch, SUBLANE_BF16))


def qnet_kernel(x_ref, w1_ref, b1_ref, w2_ref, b2_ref, w3_ref, b3_ref, o_ref,
                *, num_layers, act_dtype):
    """Whole QNet forward for one batch tile, fully resident in VMEM.

    Matmul operands are bf16 (MXU fast path) with f32 accumulation; bias-add and
    exact (erf) GELU run in `act_dtype` (bf16 on v6e/v7x, f32 on v5e).
    """
    tb = x_ref.shape[0]
    hid = w1_ref.shape[1]
    w2 = w2_ref[...]
    mm_dtype = w2.dtype

    # Hoisted bias loads + broadcasts (JAX does not CSE broadcast_in_dim; doing this
    # inside the unrolled loop would re-emit the (1,128)->(tb,128) broadcast each iter).
    b1 = jnp.broadcast_to(b1_ref[...].astype(act_dtype), (tb, hid))
    b2 = jnp.broadcast_to(b2_ref[...].astype(act_dtype), (tb, hid))

    acc = jnp.dot(x_ref[...], w1_ref[...], preferred_element_type=jnp.float32)
    h = _gelu_exact(acc.astype(act_dtype) + b1)

    # hidden_layer is a single (shared-weight) layer applied (num_layers - 1) times,
    # exactly as in the PyTorch forward loop. num_layers is static -> unrolled.
    for _ in range(num_layers - 1):
        acc = jnp.dot(h.astype(mm_dtype), w2, preferred_element_type=jnp.float32)
        h = _gelu_exact(acc.astype(act_dtype) + b2)

    out = jnp.dot(h.astype(mm_dtype), w3_ref[...], preferred_element_type=jnp.float32)
    o_ref[...] = (out + b3_ref[...]).astype(o_ref.dtype)   # b3 stays f32 (runs once)


class PreparedParams(NamedTuple):
    w1: jax.Array
    b1: jax.Array
    w2: jax.Array
    b2: jax.Array
    w3: jax.Array
    b3: jax.Array
    in_dim: int
    out_dim: int


def prepare_params(params, compute_dtype=jnp.bfloat16):
    """Pad / transpose / cast the weights ONCE, outside the per-inference hot path.

    params: (w1, b1, w2, b2, w3, b3), weights already as [in_features, out_features].
    """
    w1, b1, w2, b2, w3, b3 = params
    in_dim, hid = w1.shape
    out_dim = w3.shape[1]

    in_p = _round_up(in_dim, LANE)   # lane-dense K for the 1st matmul (avoids relayout);
    hid_p = _round_up(hid, LANE)     # zero padding is inert, extra DMA is a few KB
    out_p = _round_up(out_dim, LANE)  # lane-dense output block

    w1p = _pad2d(w1, in_p, hid_p).astype(compute_dtype)
    w2p = _pad2d(w2, hid_p, hid_p).astype(compute_dtype)
    w3p = _pad2d(w3, hid_p, out_p).astype(compute_dtype)
    b1p = _pad2d(b1.reshape(1, -1), 1, hid_p).astype(jnp.float32)
    b2p = _pad2d(b2.reshape(1, -1), 1, hid_p).astype(jnp.float32)
    b3p = _pad2d(b3.reshape(1, -1), 1, out_p).astype(jnp.float32)
    return PreparedParams(w1p, b1p, w2p, b2p, w3p, b3p, in_dim, out_dim)


def qnet_forward(x, prepared: PreparedParams, *, num_layers=NUM_LAYERS,
                 tb=None, act_dtype=None):
    """x: [B, input_dim] float32. Returns [B, output_dim] float32."""
    B = x.shape[0]
    in_p, hid_p = prepared.w1.shape
    out_p = prepared.w3.shape[1]
    cdt = prepared.w1.dtype

    if act_dtype is None:
        act_dtype = _pick_act_dtype()
    if tb is None:
        tb = _pick_tb(B)

    b_p = _round_up(B, tb)
    xp = _pad2d(x, b_p, in_p).astype(cdt)

    # Weights/biases: constant index_map -> stay resident across all grid steps.
    rep = lambda shape: pl.BlockSpec(shape, lambda i: (0, 0))

    flops = 2 * b_p * (in_p * hid_p + (num_layers - 1) * hid_p * hid_p + hid_p * out_p)
    transcendentals = b_p * hid_p * num_layers            # one erf per GELU element
    bytes_accessed = (
        xp.size * xp.dtype.itemsize
        + sum(a.size * a.dtype.itemsize for a in
              (prepared.w1, prepared.b1, prepared.w2, prepared.b2,
               prepared.w3, prepared.b3))
        + b_p * out_p * 4)

    out = pl.pallas_call(
        functools.partial(qnet_kernel, num_layers=num_layers, act_dtype=act_dtype),
        out_shape=jax.ShapeDtypeStruct((b_p, out_p), jnp.float32),
        grid=(b_p // tb,),
        in_specs=[
            pl.BlockSpec((tb, in_p), lambda i: (i, 0)),   # x tile over batch
            rep((in_p, hid_p)), rep((1, hid_p)),          # input layer
            rep((hid_p, hid_p)), rep((1, hid_p)),         # hidden layer (shared)
            rep((hid_p, out_p)), rep((1, out_p)),         # output layer
        ],
        out_specs=pl.BlockSpec((tb, out_p), lambda i: (i, 0)),
        compiler_params=pltpu.CompilerParams(
            dimension_semantics=("parallel",)),  # shards over TCs on v7x when grid >= 2
        cost_estimate=pl.CostEstimate(
            flops=flops, transcendentals=transcendentals,
            bytes_accessed=bytes_accessed),
    )(xp, prepared.w1, prepared.b1, prepared.w2, prepared.b2,
      prepared.w3, prepared.b3)

    return out[:B, :prepared.out_dim]


def noisy_linear_params(key, in_dim, out_dim, sigma_zero=0.5):
    """Deterministic NoisyLinear init; returns the *effective* weight/bias
    (mu + sigma * epsilon), i.e. exactly what NoisyLinear.forward uses."""
    k_mw, k_mb, k_ein, k_eout = jax.random.split(key, 4)
    mu_std = 1.0 / math.sqrt(in_dim)
    mu_w = mu_std * jax.random.normal(k_mw, (out_dim, in_dim), jnp.float32)
    mu_b = mu_std * jax.random.normal(k_mb, (out_dim,), jnp.float32)
    sigma = sigma_zero / math.sqrt(in_dim)

    def scale_noise(k, n):
        v = jax.random.normal(k, (n,), jnp.float32)
        return jnp.sign(v) * jnp.sqrt(jnp.abs(v))

    eps_in = scale_noise(k_ein, in_dim)
    eps_out = scale_noise(k_eout, out_dim)
    eps_w = jnp.outer(eps_out, eps_in)

    w = mu_w + sigma * eps_w            # [out, in], PyTorch convention
    b = mu_b + sigma * eps_out          # [out]
    return w.T, b                       # transpose to [in, out] for x @ W


def qnet_reference_f32(x, params, num_layers=NUM_LAYERS):
    """Pure f32 reference = true torch.nn semantics (exact-erf GELU)."""
    w1, b1, w2, b2, w3, b3 = params
    gelu = lambda v: jax.nn.gelu(v, approximate=False)
    h = gelu(x @ w1 + b1)
    for _ in range(num_layers - 1):
        h = gelu(h @ w2 + b2)
    return h @ w3 + b3


def qnet_reference_mirrored(x, params, num_layers, mm_dtype, act_dtype):
    """Pure-JAX reference mirroring the kernel numerics: bf16 matmul operands,
    f32 accumulation, act_dtype bias-add + exact-erf GELU."""
    w1, b1, w2, b2, w3, b3 = params

    def mm(a, w):
        return jnp.dot(a.astype(mm_dtype), w.astype(mm_dtype),
                       preferred_element_type=jnp.float32)

    h = _gelu_exact(mm(x, w1).astype(act_dtype) + b1.astype(act_dtype))
    for _ in range(num_layers - 1):
        h = _gelu_exact(mm(h, w2).astype(act_dtype) + b2.astype(act_dtype))
    return mm(h, w3) + b3


if __name__ == "__main__":
    key = jax.random.PRNGKey(0)
    k_x, k1, k2, k3 = jax.random.split(key, 4)

    x = jax.random.normal(k_x, (BATCH, INPUT_DIM), jnp.float32)

    w1, b1 = noisy_linear_params(k1, INPUT_DIM, HIDDEN_DIM)
    w2, b2 = noisy_linear_params(k2, HIDDEN_DIM, HIDDEN_DIM)
    w3, b3 = noisy_linear_params(k3, HIDDEN_DIM, OUTPUT_DIM)
    params = (w1, b1, w2, b2, w3, b3)

    prepared = prepare_params(params)          # one-time padding / cast (not per call)
    act_dtype = _pick_act_dtype()              # bf16 on v6e/v7x, f32 on v5e / unknown

    # jit pad + pallas_call + slice together: at B=8 wall-clock is dispatch-dominated.
    qnet = jax.jit(lambda xb: qnet_forward(xb, prepared, act_dtype=act_dtype))
    y = jax.block_until_ready(qnet(x))
    assert y.shape == (BATCH, OUTPUT_DIM), y.shape

    # 1) check against a reference that mirrors the kernel's reduced-precision numerics
    y_mirror = qnet_reference_mirrored(x, params, NUM_LAYERS, jnp.bfloat16, act_dtype)
    tol_m = 2e-2 if act_dtype is jnp.bfloat16 else 2e-3
    assert jnp.allclose(y, y_mirror, atol=tol_m, rtol=tol_m), (
        f"mirrored max abs err {jnp.max(jnp.abs(y - y_mirror))}")

    # 2) check against the true f32 (torch-parity) reference with bf16-level tolerance
    y_f32 = qnet_reference_f32(x, params)
    assert jnp.allclose(y, y_f32, atol=6e-2, rtol=6e-2), (
        f"f32 max abs err {jnp.max(jnp.abs(y - y_f32))}")

    print("KERNEL_OK")
</pallas_src>

<mosaic_0001>
module attributes {stable_mosaic.version = 11 : i64} {
  func.func @qnet_kernel(%arg0: i32, %arg1: memref<16x128xbf16, #tpu.memory_space<vmem>>, %arg2: memref<128x128xbf16, #tpu.memory_space<vmem>>, %arg3: memref<1x128xf32, #tpu.memory_space<vmem>>, %arg4: memref<128x128xbf16, #tpu.memory_space<vmem>>, %arg5: memref<1x128xf32, #tpu.memory_space<vmem>>, %arg6: memref<128x128xbf16, #tpu.memory_space<vmem>>, %arg7: memref<1x128xf32, #tpu.memory_space<vmem>>, %arg8: memref<16x128xf32, #tpu.memory_space<vmem>>) attributes {dimension_semantics = [#tpu.dimension_semantics<parallel>], iteration_bounds = array<i64: 1>, scalar_prefetch = 0 : i64, scratch_operands = 0 : i64, tpu.core_type = #tpu.core_type<tc>, window_params = [{transform_indices = @transform_0, window_bounds = array<i64: 16, 128>}, {pipeline_mode = #tpu.pipeline_mode<synchronous>, transform_indices = @transform_1, window_bounds = array<i64: 128, 128>}, {pipeline_mode = #tpu.pipeline_mode<synchronous>, transform_indices = @transform_2, window_bounds = array<i64: 1, 128>}, {pipeline_mode = #tpu.pipeline_mode<synchronous>, transform_indices = @transform_3, window_bounds = array<i64: 128, 128>}, {pipeline_mode = #tpu.pipeline_mode<synchronous>, transform_indices = @transform_4, window_bounds = array<i64: 1, 128>}, {pipeline_mode = #tpu.pipeline_mode<synchronous>, transform_indices = @transform_5, window_bounds = array<i64: 128, 128>}, {pipeline_mode = #tpu.pipeline_mode<synchronous>, transform_indices = @transform_6, window_bounds = array<i64: 1, 128>}, {transform_indices = @transform_7, window_bounds = array<i64: 16, 128>}]} {
    %c0 = arith.constant 0 : index
    %c0_0 = arith.constant 0 : index
    %0 = vector.load %arg4[%c0, %c0_0] : memref<128x128xbf16, #tpu.memory_space<vmem>>, vector<128x128xbf16>
    %c0_1 = arith.constant 0 : index
    %c0_2 = arith.constant 0 : index
    %1 = vector.load %arg3[%c0_1, %c0_2] : memref<1x128xf32, #tpu.memory_space<vmem>>, vector<1x128xf32>
    %2 = vector.shape_cast %1 : vector<1x128xf32> to vector<1x128xf32>
    %3 = vector.broadcast %2 : vector<1x128xf32> to vector<16x128xf32>
    %c0_3 = arith.constant 0 : index
    %c0_4 = arith.constant 0 : index
    %4 = vector.load %arg5[%c0_3, %c0_4] : memref<1x128xf32, #tpu.memory_space<vmem>>, vector<1x128xf32>
    %5 = vector.shape_cast %4 : vector<1x128xf32> to vector<1x128xf32>
    %6 = vector.broadcast %5 : vector<1x128xf32> to vector<16x128xf32>
    %c0_5 = arith.constant 0 : index
    %c0_6 = arith.constant 0 : index
    %7 = vector.load %arg1[%c0_5, %c0_6] : memref<16x128xbf16, #tpu.memory_space<vmem>>, vector<16x128xbf16>
    %c0_7 = arith.constant 0 : index
    %c0_8 = arith.constant 0 : index
    %8 = vector.load %arg2[%c0_7, %c0_8] : memref<128x128xbf16, #tpu.memory_space<vmem>>, vector<128x128xbf16>
    %cst = arith.constant dense<0.000000e+00> : vector<16x128xf32>
    %9 = tpu.matmul %7, %8, %cst {dimension_numbers = #tpu.dot_dimension_numbers<[1], [0], [0], [1], [0, 0, 1, 1], [], []>} : vector<16x128xbf16>, vector<128x128xbf16>, vector<16x128xf32> -> vector<16x128xf32>
    %10 = arith.addf %9, %3 : vector<16x128xf32>
    %cst_9 = arith.constant 5.000000e-01 : f32
    %11 = vector.broadcast %cst_9 : f32 to vector<16x128xf32>
    %12 = arith.mulf %11, %10 : vector<16x128xf32>
    %cst_10 = arith.constant 0.707106769 : f32
    %13 = vector.broadcast %cst_10 : f32 to vector<16x128xf32>
    %14 = arith.mulf %10, %13 : vector<16x128xf32>
    %15 = math.erf %14 : vector<16x128xf32>
    %cst_11 = arith.constant 1.000000e+00 : f32
    %16 = vector.broadcast %cst_11 : f32 to vector<16x128xf32>
    %17 = arith.addf %16, %15 : vector<16x128xf32>
    %18 = arith.mulf %12, %17 : vector<16x128xf32>
    %19 = arith.truncf %18 : vector<16x128xf32> to vector<16x128xbf16>
    %cst_12 = arith.constant dense<0.000000e+00> : vector<16x128xf32>
    %20 = tpu.matmul %19, %0, %cst_12 {dimension_numbers = #tpu.dot_dimension_numbers<[1], [0], [0], [1], [0, 0, 1, 1], [], []>} : vector<16x128xbf16>, vector<128x128xbf16>, vector<16x128xf32> -> vector<16x128xf32>
    %21 = arith.addf %20, %6 : vector<16x128xf32>
    %cst_13 = arith.constant 5.000000e-01 : f32
    %22 = vector.broadcast %cst_13 : f32 to vector<16x128xf32>
    %23 = arith.mulf %22, %21 : vector<16x128xf32>
    %cst_14 = arith.constant 0.707106769 : f32
    %24 = vector.broadcast %cst_14 : f32 to vector<16x128xf32>
    %25 = arith.mulf %21, %24 : vector<16x128xf32>
    %26 = math.erf %25 : vector<16x128xf32>
    %cst_15 = arith.constant 1.000000e+00 : f32
    %27 = vector.broadcast %cst_15 : f32 to vector<16x128xf32>
    %28 = arith.addf %27, %26 : vector<16x128xf32>
    %29 = arith.mulf %23, %28 : vector<16x128xf32>
    %30 = arith.truncf %29 : vector<16x128xf32> to vector<16x128xbf16>
    %cst_16 = arith.constant dense<0.000000e+00> : vector<16x128xf32>
    %31 = tpu.matmul %30, %0, %cst_16 {dimension_numbers = #tpu.dot_dimension_numbers<[1], [0], [0], [1], [0, 0, 1, 1], [], []>} : vector<16x128xbf16>, vector<128x128xbf16>, vector<16x128xf32> -> vector<16x128xf32>
    %32 = arith.addf %31, %6 : vector<16x128xf32>
    %cst_17 = arith.constant 5.000000e-01 : f32
    %33 = vector.broadcast %cst_17 : f32 to vector<16x128xf32>
    %34 = arith.mulf %33, %32 : vector<16x128xf32>
    %cst_18 = arith.constant 0.707106769 : f32
    %35 = vector.broadcast %cst_18 : f32 to vector<16x128xf32>
    %36 = arith.mulf %32, %35 : vector<16x128xf32>
    %37 = math.erf %36 : vector<16x128xf32>
    %cst_19 = arith.constant 1.000000e+00 : f32
    %38 = vector.broadcast %cst_19 : f32 to vector<16x128xf32>
    %39 = arith.addf %38, %37 : vector<16x128xf32>
    %40 = arith.mulf %34, %39 : vector<16x128xf32>
    %41 = arith.truncf %40 : vector<16x128xf32> to vector<16x128xbf16>
    %c0_20 = arith.constant 0 : index
    %c0_21 = arith.constant 0 : index
    %42 = vector.load %arg6[%c0_20, %c0_21] : memref<128x128xbf16, #tpu.memory_space<vmem>>, vector<128x128xbf16>
    %cst_22 = arith.constant dense<0.000000e+00> : vector<16x128xf32>
    %43 = tpu.matmul %41, %42, %cst_22 {dimension_numbers = #tpu.dot_dimension_numbers<[1], [0], [0], [1], [0, 0, 1, 1], [], []>} : vector<16x128xbf16>, vector<128x128xbf16>, vector<16x128xf32> -> vector<16x128xf32>
    %c0_23 = arith.constant 0 : index
    %c0_24 = arith.constant 0 : index
    %44 = vector.load %arg7[%c0_23, %c0_24] : memref<1x128xf32, #tpu.memory_space<vmem>>, vector<1x128xf32>
    %45 = vector.broadcast %44 : vector<1x128xf32> to vector<16x128xf32>
    %46 = arith.addf %43, %45 : vector<16x128xf32>
    %c0_25 = arith.constant 0 : index
    %c0_26 = arith.constant 0 : index
    %47 = vector.load %arg8[%c0_25, %c0_26] : memref<16x128xf32, #tpu.memory_space<vmem>>, vector<16x128xf32>
    tpu.vector_store %arg8[%c0_25, %c0_26], %46 {strides = array<i32>} : memref<16x128xf32, #tpu.memory_space<vmem>>, vector<16x128xf32>,
    return
  }
  func.func @transform_0(%arg0: i32) -> (i32, i32) {
    %c0_i32 = arith.constant 0 : i32
    %c0_i32_0 = arith.constant 0 : i32
    return %arg0, %c0_i32 : i32, i32
  }
  func.func @transform_1(%arg0: i32) -> (i32, i32) {
    %c0_i32 = arith.constant 0 : i32
    %c0_i32_0 = arith.constant 0 : i32
    %c0_i32_1 = arith.constant 0 : i32
    return %c0_i32, %c0_i32_0 : i32, i32
  }
  func.func @transform_2(%arg0: i32) -> (i32, i32) {
    %c0_i32 = arith.constant 0 : i32
    %c0_i32_0 = arith.constant 0 : i32
    %c0_i32_1 = arith.constant 0 : i32
    return %c0_i32, %c0_i32_0 : i32, i32
  }
  func.func @transform_3(%arg0: i32) -> (i32, i32) {
    %c0_i32 = arith.constant 0 : i32
    %c0_i32_0 = arith.constant 0 : i32
    %c0_i32_1 = arith.constant 0 : i32
    return %c0_i32, %c0_i32_0 : i32, i32
  }
  func.func @transform_4(%arg0: i32) -> (i32, i32) {
    %c0_i32 = arith.constant 0 : i32
    %c0_i32_0 = arith.constant 0 : i32
    %c0_i32_1 = arith.constant 0 : i32
    return %c0_i32, %c0_i32_0 : i32, i32
  }
  func.func @transform_5(%arg0: i32) -> (i32, i32) {
    %c0_i32 = arith.constant 0 : i32
    %c0_i32_0 = arith.constant 0 : i32
    %c0_i32_1 = arith.constant 0 : i32
    return %c0_i32, %c0_i32_0 : i32, i32
  }
  func.func @transform_6(%arg0: i32) -> (i32, i32) {
    %c0_i32 = arith.constant 0 : i32
    %c0_i32_0 = arith.constant 0 : i32
    %c0_i32_1 = arith.constant 0 : i32
    return %c0_i32, %c0_i32_0 : i32, i32
  }
  func.func @transform_7(%arg0: i32) -> (i32, i32) {
    %c0_i32 = arith.constant 0 : i32
    %c0_i32_0 = arith.constant 0 : i32
    return %arg0, %c0_i32 : i32, i32
  }
}

</mosaic_0001>

<bundles_post_ra>
// kernel: _lambda_.1
= control target key start
LH: loop header
LB: loop body
LE: loop exit
PB: predicated region body
PF: predicated region fallthrough
CT: control target
= control target key end

     0   :  { %12 = vsyncpa [#allocation3], 0  ;;  %s975_s0 = inlined_call_operand.vmem [shape: bf16[16,128], index: 0, kind: input, shape index: {}]   ;;  %s976_s1 = inlined_call_operand.hbm [shape: bf16[128,128], index: 1, kind: input, shape index: {}]   ;;  %s977_s2 = inlined_call_operand.vmem [shape: f32[1,128], index: 2, kind: input, shape index: {}]   ;;  %s978_s3 = inlined_call_operand.hbm [shape: bf16[128,128], index: 3, kind: input, shape index: {}]   ;;  %s979_s4 = inlined_call_operand.vmem [shape: f32[1,128], index: 4, kind: input, shape index: {}]   ;;  %s980_s5 = inlined_call_operand.hbm [shape: bf16[128,128], index: 5, kind: input, shape index: {}]   ;;  %s981_s6 = inlined_call_operand.vmem [shape: f32[1,128], index: 6, kind: input, shape index: {}]   ;;  %s982_s7 = inlined_call_operand.vmem [shape: f32[16,128], index: 7, kind: output, shape index: {}]  }
   0x1   :  { %13 = vsyncpa [#allocation5], 0  ;;  %s35_s26 = sshll.u32 %s978_s3, 4  ;;  %s843_s27 = smov [#allocation4]   ;;  %s36_s26 = int_to_ptr.hbm [resolvable:$true] %s35_s26 }
   0x2   :  { %s37_s28 = sshll.u32 %s843_s27, 4  ;;  %s20_s8 = sshll.u32 %s976_s1, 4  ;;  %s38_s28 = int_to_ptr.vmem [resolvable:$true] %s37_s28  ;;  %s21_s8 = int_to_ptr.hbm [resolvable:$true] %s20_s8 }
   0x3   :  { %s844_s9 = smov 64   ;;  %s845_s10 = smov 4  }
   0x4   :  { %43 = dma.hbm_to_vmem [thread:$0]  %s36_s26, 1024, %s38_s28, [#allocation5], %s844_s9, %s844_s9, %s845_s10  }
   0x5   :  { %s846_s11 = smov [#allocation2]   ;;  %s50_s15 = sshll.u32 %s980_s5, 4  ;;  %s51_s15 = int_to_ptr.hbm [resolvable:$true] %s50_s15 }
   0x6   :  { %s22_s12 = sshll.u32 %s846_s11, 4  ;;  %s847_s3 = smov [#allocation6]   ;;  %s23_s12 = int_to_ptr.vmem [resolvable:$true] %s22_s12 }
   0x7   :  { %28 = dma.hbm_to_vmem [thread:$0]  %s21_s8, 1024, %s23_s12, [#allocation3], %s844_s9, %s844_s9, %s845_s10  }
   0x8   :  { %s52_s16 = sshll.u32 %s847_s3, 4  ;;  %s53_s16 = int_to_ptr.vmem [resolvable:$true] %s52_s16 }
   0x9   :  { %58 = dma.hbm_to_vmem [thread:$0]  %s51_s15, 1024, %s53_s16, [#allocation5], %s844_s9, %s844_s9, %s845_s10  }
   0xa   :  { %839 = dma.done.wait [#allocation3], 1024  }
   0xb   :  { %840 = vsyncadd [#allocation3], 4294966272 }
   0xc   :  { %841 = dma.done.wait [#allocation5], 2048  }
   0xd   :  { %842 = vsyncadd [#allocation5], 4294965248  ;;  %v738_v0 = vld [vmem:[#allocation2 + $0x38] sm:$0xff]  ;;  %v737_v1 = vld [vmem:[#allocation2 + $0x30] sm:$0xff] }
   0xe   :  { %169 = vmatpush.bf16.msra.mxu0 %v738_v0  ;;  %v736_v2 = vld [vmem:[#allocation2 + $0x28] sm:$0xff]  ;;  %v735_v3 = vld [vmem:[#allocation2 + $0x20] sm:$0xff]  ;;  %v734_v4 = vld [vmem:[#allocation2 + $0x18] sm:$0xff] }
   0xf   :  { %v733_v5 = vld [vmem:[#allocation2 + $0x10] sm:$0xff]  ;;  %v732_v6 = vld [vmem:[#allocation2 + $0x8] sm:$0xff]  ;;  %v731_v7 = vld [vmem:[#allocation2] sm:$0xff] }
  0x10   :  { %v730_v8 = vld [vmem:[%s975_s0] sm:$0xff]  ;;  %v729_v10 = vld [vmem:[#allocation4 + $0x38] sm:$0xff]  ;;  %v728_v14 = vld [vmem:[#allocation4 + $0x30] sm:$0xff] }
  0x11   :  { %v752_v9 = vld [vmem:[%s977_s2] ss:$0 sm:$0xff]  ;;  %320 = vmatpush.bf16.msra.mxu1 %v729_v10  ;;  %423 = vmatpush.bf16.msra.mxu2 %v729_v10  ;;  %v727_v16 = vld [vmem:[#allocation4 + $0x28] sm:$0xff]  ;;  %v725_v27 = vld [vmem:[#allocation4 + $0x18] sm:$0xff] }
  0x12   :  { %170 = vmatpush.bf16.msra.mxu0 %v737_v1  ;;  %v726_v21 = vld [vmem:[#allocation4 + $0x20] sm:$0xff]  ;;  %v724_v33 = vld [vmem:[#allocation4 + $0x10] sm:$0xff]  ;;  %v723_v41 = vld [vmem:[#allocation4 + $0x8] sm:$0xff] }
  0x13   :  { %v722_v48 = vld [vmem:[#allocation4] sm:$0xff] }
  0x15   :  { %321 = vmatpush.bf16.msra.mxu1 %v728_v14  ;;  %424 = vmatpush.bf16.msra.mxu2 %v728_v14 }
  0x16   :  { %171 = vmatpush.bf16.msra.mxu0 %v736_v2 }
  0x19   :  { %322 = vmatpush.bf16.msra.mxu1 %v727_v16  ;;  %425 = vmatpush.bf16.msra.mxu2 %v727_v16 }
  0x1a   :  { %172 = vmatpush.bf16.msra.mxu0 %v735_v3 }
  0x1d   :  { %323 = vmatpush.bf16.msra.mxu1 %v726_v21  ;;  %426 = vmatpush.bf16.msra.mxu2 %v726_v21 }
  0x1e   :  { %173 = vmatpush.bf16.msra.mxu0 %v734_v4 }
  0x21   :  { %324 = vmatpush.bf16.msra.mxu1 %v725_v27  ;;  %427 = vmatpush.bf16.msra.mxu2 %v725_v27 }
  0x22   :  { %174 = vmatpush.bf16.msra.mxu0 %v733_v5 }
  0x25   :  { %325 = vmatpush.bf16.msra.mxu1 %v724_v33  ;;  %428 = vmatpush.bf16.msra.mxu2 %v724_v33 }
  0x26   :  { %175 = vmatpush.bf16.msra.mxu0 %v732_v6 }
  0x29   :  { %326 = vmatpush.bf16.msra.mxu1 %v723_v41  ;;  %429 = vmatpush.bf16.msra.mxu2 %v723_v41 }
  0x2a   :  { %176 = vmatpush.bf16.msra.mxu0 %v731_v7 }
  0x2d   :  { %177 = vmatmul.bf16.vlgmr.msra.gmra.mxu0 %v730_v8  ;;  %327 = vmatpush.bf16.msra.mxu1 %v722_v48 }
  0x2e   :  { %430 = vmatpush.bf16.msra.mxu2 %v722_v48 }
  0xaa   :  { %v178_v11 = vpop.f32.mrf.mxu0 }
  0xab   :  { %v903_v12 = vadd.f32 %v752_v9, %v178_v11 }
  0xad   :  { %v906_v13 = vmul.f32 0.70710677, %v903_v12 }
  0xaf   :  { %v187_v15 = vmul.f32 %v906_v13, %v906_v13 }
  0xb1   :  { %v188_v17 = vmin.f32 %v187_v15, 16.0 }
  0xb2   :  { %v180_v18 = vpop.f32.mrf.mxu0 }
  0xb3   :  { %v189_v19 = vmul.f32 2.1237322e-06, %v188_v17  ;;  %v910_v20 = vadd.f32 %v752_v9, %v180_v18  ;;  %v200_v22 = vmul.f32 3.8918573e-05, %v188_v17 }
  0xb5   :  { %v190_v23 = vadd.f32 0.00028619796, %v189_v19  ;;  %v913_v24 = vmul.f32 0.70710677, %v910_v20  ;;  %v201_v25 = vadd.f32 0.001143296, %v200_v22 }
  0xb7   :  { %v227_v26 = vmul.f32 %v913_v24, %v913_v24  ;;  %v191_v28 = vmul.f32 %v190_v23, %v188_v17  ;;  %v202_v29 = vmul.f32 %v201_v25, %v188_v17 }
  0xb9   :  { %v228_v30 = vmin.f32 %v227_v26, 16.0  ;;  %v203_v31 = vadd.f32 0.014752088, %v202_v29  ;;  %v192_v35 = vadd.f32 0.0036580483, %v191_v28 }
  0xbb   :  { %v229_v32 = vmul.f32 2.1237322e-06, %v228_v30  ;;  %v240_v34 = vmul.f32 3.8918573e-05, %v228_v30  ;;  %v204_v36 = vmul.f32 %v203_v31, %v188_v17  ;;  %v193_v43 = vmul.f32 %v192_v35, %v188_v17 }
  0xbc   :  { %v184_v35 = vmul.f32 0.5, %v910_v20 }
  0xbd   :  { %v230_v37 = vadd.f32 0.00028619796, %v229_v32  ;;  %v241_v38 = vadd.f32 0.001143296, %v240_v34  ;;  %v205_v39 = vadd.f32 0.112945676, %v204_v36 }
  0xbe   :  { %v194_v50 = vadd.f32 0.05243302, %v193_v43  ;;  %v183_v34 = vmul.f32 0.5, %v903_v12 }
  0xbf   :  { %v231_v40 = vmul.f32 %v230_v37, %v228_v30  ;;  %v242_v42 = vmul.f32 %v241_v38, %v228_v30  ;;  %v206_v44 = vmul.f32 %v205_v39, %v188_v17 }
  0xc0   :  { %v195_v56 = vmul.f32 %v194_v50, %v188_v17 }
  0xc1   :  { %v232_v45 = vadd.f32 0.0036580483, %v231_v40  ;;  %v243_v46 = vadd.f32 0.014752088, %v242_v42  ;;  %v207_v47 = vadd.f32 0.4994258, %v206_v44 }
  0xc2   :  { %v196_v60 = vadd.f32 0.18741608, %v195_v56 }
  0xc3   :  { %v244_v49 = vmul.f32 %v243_v46, %v228_v30  ;;  %v208_v51 = vmul.f32 %v207_v47, %v188_v17  ;;  %v233_v52 = vmul.f32 %v232_v45, %v228_v30 }
  0xc4   :  { %v197_v1 = vmul.f32 %v196_v60, %v188_v17 }
  0xc5   :  { %v245_v53 = vadd.f32 0.112945676, %v244_v49  ;;  %v209_v54 = vadd.f32 1.0, %v208_v51  ;;  %v234_v57 = vadd.f32 0.05243302, %v233_v52 }
  0xc6   :  { %v198_v7 = vadd.f32 1.1283791, %v197_v1 }
  0xc7   :  { %v246_v55 = vmul.f32 %v245_v53, %v228_v30  ;;  %755 = vrcp.f32 %v209_v54  ;;  %v235_v61 = vmul.f32 %v234_v57, %v228_v30  ;;  %v221_v4 = vand.u32 2147483648, %v209_v54 }
  0xc8   :  { %v219_v6 = vand.u32 2147483647, %v209_v54  ;;  %vm215_vm1 = vweird.f32 %v209_v54  ;;  %v199_v16 = vmul.f32 %v198_v7, %v906_v13 }
  0xc9   :  { %v247_v58 = vadd.f32 0.4994258, %v246_v55  ;;  %v236_v2 = vadd.f32 0.18741608, %v235_v61  ;;  %v222_v11 = vor.u32 1.1754944e-38, %v221_v4 }
  0xca   :  { %vm220_vm3 = vcmp.eq.f32.partialorder %v219_v6, 8.507059e+37 }
  0xcb   :  { %v248_v59 = vmul.f32 %v247_v58, %v228_v30  ;;  %v237_v9 = vmul.f32 %v236_v2, %v228_v30 }
  0xcd   :  { %v249_v62 = vadd.f32 1.0, %v248_v59  ;;  %v756_v63 = vpop.eup %755  ;;  %v238_v19 = vadd.f32 1.1283791, %v237_v9 }
  0xce   :  { %v211_v0 = vmul.f32 %v756_v63, %v209_v54  ;;  %vm216_vm0 = vweird.f32 %v756_v63 }
  0xcf   :  { %757 = vrcp.f32 %v249_v62  ;;  %vm217_vm2 = vmor %vm215_vm1, %vm216_vm0  ;;  %v261_v21 = vand.u32 2147483648, %v249_v62  ;;  %v259_v25 = vand.u32 2147483647, %v249_v62  ;;  %vm255_vm5 = vweird.f32 %v249_v62 }
  0xd0   :  { %v212_v3 = vsub.f32 1.0, %v211_v0  ;;  %v239_v28 = vmul.f32 %v238_v19, %v913_v24  ;;  %v924_v24 = vld [vmem:[%s979_s4] ss:$0 sm:$0xff] }
  0xd1   :  { %v262_v27 = vor.u32 1.1754944e-38, %v261_v21  ;;  %vm260_vm7 = vcmp.eq.f32.partialorder %v259_v25, 8.507059e+37 }
  0xd2   :  { %v213_v5 = vmul.f32 %v756_v63, %v212_v3 }
  0xd4   :  { %v214_v10 = vadd.f32 %v756_v63, %v213_v5 }
  0xd5   :  { %v758_v8 = vpop.eup %757 }
  0xd6   :  { %v251_v14 = vmul.f32 %v758_v8, %v249_v62  ;;  %v218_v15 = vsel %vm217_vm2, %v756_v63, %v214_v10  ;;  %vm256_vm4 = vweird.f32 %v758_v8 }
  0xd7   :  { %v223_v18 = vsel %vm220_vm3, %v222_v11, %v218_v15  ;;  %vm257_vm6 = vmor %vm255_vm5, %vm256_vm4 }
  0xd8   :  { %v252_v17 = vsub.f32 1.0, %v251_v14  ;;  %v224_v22 = vmul.f32 %v223_v18, %v199_v16 }
  0xda   :  { %v253_v23 = vmul.f32 %v758_v8, %v252_v17  ;;  %v652_v29 = vclamps-f32 %v224_v22, 1.0 }
  0xdc   :  { %v254_v26 = vadd.f32 %v758_v8, %v253_v23  ;;  %v267_v33 = vadd.f32 1.0, %v652_v29 }
  0xde   :  { %v258_v30 = vsel %vm257_vm6, %v758_v8, %v254_v26  ;;  %v269_v37 = vmul.f32 %v267_v33, %v183_v34 }
  0xdf   :  { %v263_v31 = vsel %vm260_vm7, %v262_v27, %v258_v30 }
  0xe0   :  { %v264_v32 = vmul.f32 %v263_v31, %v239_v28 }
  0xe2   :  { %v653_v13 = vclamps-f32 %v264_v32, 1.0 }
  0xe4   :  { %v268_v36 = vadd.f32 1.0, %v653_v13 }
  0xe6   :  { %v270_v38 = vmul.f32 %v268_v36, %v184_v35 }
  0xe8   :  { %v271_v39 = vpack.c.bf16 %v270_v38, %v269_v37 }
  0xea   :  { %328 = vmatmul.bf16.vlgmr.msra.gmra.mxu1 %v271_v39 }
 0x167   :  { %v329_v40 = vpop.f32.mrf.mxu1 }
 0x168   :  { %v927_v41 = vadd.f32 %v924_v24, %v329_v40 }
 0x16a   :  { %v930_v42 = vmul.f32 0.70710677, %v927_v41 }
 0x16c   :  { %v338_v12 = vmul.f32 %v930_v42, %v930_v42 }
 0x16e   :  { %v339_v20 = vmin.f32 %v338_v12, 16.0 }
 0x16f   :  { %v331_v43 = vpop.f32.mrf.mxu1 }
 0x170   :  { %v340_v44 = vmul.f32 2.1237322e-06, %v339_v20  ;;  %v935_v45 = vadd.f32 %v924_v24, %v331_v43  ;;  %v351_v46 = vmul.f32 3.8918573e-05, %v339_v20 }
 0x172   :  { %v341_v47 = vadd.f32 0.00028619796, %v340_v44  ;;  %v938_v48 = vmul.f32 0.70710677, %v935_v45  ;;  %v352_v49 = vadd.f32 0.001143296, %v351_v46 }
 0x174   :  { %v378_v50 = vmul.f32 %v938_v48, %v938_v48  ;;  %v342_v51 = vmul.f32 %v341_v47, %v339_v20  ;;  %v353_v52 = vmul.f32 %v352_v49, %v339_v20 }
 0x176   :  { %v379_v53 = vmin.f32 %v378_v50, 16.0  ;;  %v354_v54 = vadd.f32 0.014752088, %v353_v52  ;;  %v343_v57 = vadd.f32 0.0036580483, %v342_v51 }
 0x178   :  { %v380_v55 = vmul.f32 2.1237322e-06, %v379_v53  ;;  %v391_v56 = vmul.f32 3.8918573e-05, %v379_v53  ;;  %v355_v58 = vmul.f32 %v354_v54, %v339_v20  ;;  %v344_v0 = vmul.f32 %v343_v57, %v339_v20 }
 0x17a   :  { %v381_v59 = vadd.f32 0.00028619796, %v380_v55  ;;  %v392_v60 = vadd.f32 0.001143296, %v391_v56  ;;  %v356_v61 = vadd.f32 0.112945676, %v355_v58 }
 0x17b   :  { %v345_v6 = vadd.f32 0.05243302, %v344_v0  ;;  %v334_v55 = vmul.f32 0.5, %v927_v41  ;;  %v335_v56 = vmul.f32 0.5, %v935_v45  ;;  %v745_v0 = vld [vmem:[#allocation6 + $0x30] sm:$0xff]  ;;  %v744_v45 = vld [vmem:[#allocation6 + $0x28] sm:$0xff] }
 0x17c   :  { %v382_v62 = vmul.f32 %v381_v59, %v379_v53  ;;  %v393_v63 = vmul.f32 %v392_v60, %v379_v53  ;;  %v357_v1 = vmul.f32 %v356_v61, %v339_v20 }
 0x17d   :  { %v346_v14 = vmul.f32 %v345_v6, %v339_v20  ;;  %v743_v6 = vld [vmem:[#allocation6 + $0x20] sm:$0xff] }
 0x17e   :  { %v383_v2 = vadd.f32 0.0036580483, %v382_v62  ;;  %v394_v3 = vadd.f32 0.014752088, %v393_v63  ;;  %v358_v4 = vadd.f32 0.4994258, %v357_v1 }
 0x17f   :  { %v347_v17 = vadd.f32 0.18741608, %v346_v14  ;;  %v746_v62 = vld [vmem:[#allocation6 + $0x38] sm:$0xff] }
 0x180   :  { %v395_v5 = vmul.f32 %v394_v3, %v379_v53  ;;  %v359_v7 = vmul.f32 %v358_v4, %v339_v20  ;;  %v384_v8 = vmul.f32 %v383_v2, %v379_v53  ;;  %594 = vmatpush.bf16.msra.mxu3 %v746_v62  ;;  %v742_v14 = vld [vmem:[#allocation6 + $0x18] sm:$0xff] }
 0x181   :  { %v348_v25 = vmul.f32 %v347_v17, %v339_v20 }
 0x182   :  { %v396_v9 = vadd.f32 0.112945676, %v395_v5  ;;  %v360_v10 = vadd.f32 1.0, %v359_v7  ;;  %v385_v15 = vadd.f32 0.05243302, %v384_v8 }
 0x183   :  { %v349_v31 = vadd.f32 1.1283791, %v348_v25 }
 0x184   :  { %v397_v11 = vmul.f32 %v396_v9, %v379_v53  ;;  %759 = vrcp.f32 %v360_v10  ;;  %v386_v19 = vmul.f32 %v385_v15, %v379_v53  ;;  %v372_v28 = vand.u32 2147483648, %v360_v10  ;;  %595 = vmatpush.bf16.msra.mxu3 %v745_v0 }
 0x185   :  { %v370_v30 = vand.u32 2147483647, %v360_v10  ;;  %vm366_vm9 = vweird.f32 %v360_v10  ;;  %v350_v37 = vmul.f32 %v349_v31, %v930_v42 }
 0x186   :  { %v398_v16 = vadd.f32 0.4994258, %v397_v11  ;;  %v387_v26 = vadd.f32 0.18741608, %v386_v19  ;;  %v373_v34 = vor.u32 1.1754944e-38, %v372_v28 }
 0x187   :  { %vm371_vm11 = vcmp.eq.f32.partialorder %v370_v30, 8.507059e+37  ;;  %v740_v30 = vld [vmem:[#allocation6 + $0x8] sm:$0xff] }
 0x188   :  { %v399_v18 = vmul.f32 %v398_v16, %v379_v53  ;;  %v388_v13 = vmul.f32 %v387_v26, %v379_v53  ;;  %596 = vmatpush.bf16.msra.mxu3 %v744_v45 }
 0x18a   :  { %v400_v21 = vadd.f32 1.0, %v399_v18  ;;  %v760_v22 = vpop.eup %759  ;;  %v389_v40 = vadd.f32 1.1283791, %v388_v13 }
 0x18b   :  { %v362_v23 = vmul.f32 %v760_v22, %v360_v10  ;;  %vm367_vm8 = vweird.f32 %v760_v22 }
 0x18c   :  { %761 = vrcp.f32 %v400_v21  ;;  %vm368_vm10 = vmor %vm366_vm9, %vm367_vm8  ;;  %v412_v12 = vand.u32 2147483648, %v400_v21  ;;  %v410_v44 = vand.u32 2147483647, %v400_v21  ;;  %vm406_vm13 = vweird.f32 %v400_v21  ;;  %597 = vmatpush.bf16.msra.mxu3 %v743_v6 }
 0x18d   :  { %v363_v27 = vsub.f32 1.0, %v362_v23  ;;  %v390_v49 = vmul.f32 %v389_v40, %v938_v48 }
 0x18e   :  { %v413_v47 = vor.u32 1.1754944e-38, %v412_v12  ;;  %vm411_vm15 = vcmp.eq.f32.partialorder %v410_v44, 8.507059e+37 }
 0x18f   :  { %v364_v29 = vmul.f32 %v760_v22, %v363_v27 }
 0x190   :  { %598 = vmatpush.bf16.msra.mxu3 %v742_v14 }
 0x191   :  { %v365_v33 = vadd.f32 %v760_v22, %v364_v29 }
 0x192   :  { %v762_v32 = vpop.eup %761 }
 0x193   :  { %v402_v35 = vmul.f32 %v762_v32, %v400_v21  ;;  %v369_v36 = vsel %vm368_vm10, %v760_v22, %v365_v33  ;;  %vm407_vm12 = vweird.f32 %v762_v32  ;;  %v741_v21 = vld [vmem:[#allocation6 + $0x10] sm:$0xff] }
 0x194   :  { %v374_v38 = vsel %vm371_vm11, %v373_v34, %v369_v36  ;;  %vm408_vm14 = vmor %vm406_vm13, %vm407_vm12  ;;  %599 = vmatpush.bf16.msra.mxu3 %v741_v21  ;;  %v739_v36 = vld [vmem:[#allocation6] sm:$0xff] }
 0x195   :  { %v403_v39 = vsub.f32 1.0, %v402_v35  ;;  %v375_v20 = vmul.f32 %v374_v38, %v350_v37 }
 0x197   :  { %v404_v43 = vmul.f32 %v762_v32, %v403_v39  ;;  %v686_v50 = vclamps-f32 %v375_v20, 1.0 }
 0x198   :  { %600 = vmatpush.bf16.msra.mxu3 %v740_v30 }
 0x199   :  { %v405_v46 = vadd.f32 %v762_v32, %v404_v43  ;;  %v418_v54 = vadd.f32 1.0, %v686_v50 }
 0x19b   :  { %v409_v51 = vsel %vm408_vm14, %v762_v32, %v405_v46  ;;  %v420_v58 = vmul.f32 %v418_v54, %v334_v55 }
 0x19c   :  { %v414_v52 = vsel %vm411_vm15, %v413_v47, %v409_v51  ;;  %601 = vmatpush.bf16.msra.mxu3 %v739_v36 }
 0x19d   :  { %v415_v53 = vmul.f32 %v414_v52, %v390_v49 }
 0x19f   :  { %v687_v42 = vclamps-f32 %v415_v53, 1.0 }
 0x1a1   :  { %v419_v57 = vadd.f32 1.0, %v687_v42 }
 0x1a3   :  { %v421_v59 = vmul.f32 %v419_v57, %v335_v56 }
 0x1a5   :  { %v422_v60 = vpack.c.bf16 %v421_v59, %v420_v58 }
 0x1a7   :  { %431 = vmatmul.bf16.vlgmr.msra.gmra.mxu2 %v422_v60 }
 0x22a   :  { %v432_v61 = vpop.f32.mrf.mxu2 }
 0x22b   :  { %v947_v48 = vadd.f32 %v924_v24, %v432_v61 }
 0x22d   :  { %v950_v63 = vmul.f32 0.70710677, %v947_v48 }
 0x22f   :  { %v441_v41 = vmul.f32 %v950_v63, %v950_v63 }
 0x231   :  { %v442_v1 = vmin.f32 %v441_v41, 16.0 }
 0x232   :  { %v434_v2 = vpop.f32.mrf.mxu2 }
 0x233   :  { %v443_v3 = vmul.f32 2.1237322e-06, %v442_v1  ;;  %v955_v4 = vadd.f32 %v924_v24, %v434_v2  ;;  %v454_v5 = vmul.f32 3.8918573e-05, %v442_v1 }
 0x235   :  { %v444_v7 = vadd.f32 0.00028619796, %v443_v3  ;;  %v958_v8 = vmul.f32 0.70710677, %v955_v4  ;;  %v455_v9 = vadd.f32 0.001143296, %v454_v5 }
 0x236   :  { %v438_v21 = vmul.f32 0.5, %v955_v4 }
 0x237   :  { %v481_v10 = vmul.f32 %v958_v8, %v958_v8  ;;  %v445_v11 = vmul.f32 %v444_v7, %v442_v1  ;;  %v456_v15 = vmul.f32 %v455_v9, %v442_v1 }
 0x239   :  { %v482_v16 = vmin.f32 %v481_v10, 16.0  ;;  %v457_v18 = vadd.f32 0.014752088, %v456_v15  ;;  %v446_v19 = vadd.f32 0.0036580483, %v445_v11 }
 0x23b   :  { %v483_v17 = vmul.f32 2.1237322e-06, %v482_v16  ;;  %v494_v24 = vmul.f32 3.8918573e-05, %v482_v16  ;;  %v458_v22 = vmul.f32 %v457_v18, %v442_v1  ;;  %v447_v29 = vmul.f32 %v446_v19, %v442_v1 }
 0x23c   :  { %v437_v19 = vmul.f32 0.5, %v947_v48 }
 0x23d   :  { %v484_v23 = vadd.f32 0.00028619796, %v483_v17  ;;  %v495_v25 = vadd.f32 0.001143296, %v494_v24  ;;  %v459_v26 = vadd.f32 0.112945676, %v458_v22 }
 0x23e   :  { %v448_v35 = vadd.f32 0.05243302, %v447_v29 }
 0x23f   :  { %v485_v27 = vmul.f32 %v484_v23, %v482_v16  ;;  %v496_v28 = vmul.f32 %v495_v25, %v482_v16  ;;  %v460_v31 = vmul.f32 %v459_v26, %v442_v1 }
 0x240   :  { %v449_v20 = vmul.f32 %v448_v35, %v442_v1 }
 0x241   :  { %v486_v32 = vadd.f32 0.0036580483, %v485_v27  ;;  %v497_v13 = vadd.f32 0.014752088, %v496_v28  ;;  %v461_v33 = vadd.f32 0.4994258, %v460_v31 }
 0x242   :  { %v450_v47 = vadd.f32 0.18741608, %v449_v20 }
 0x243   :  { %v498_v34 = vmul.f32 %v497_v13, %v482_v16  ;;  %v462_v37 = vmul.f32 %v461_v33, %v442_v1  ;;  %v487_v38 = vmul.f32 %v486_v32, %v482_v16 }
 0x244   :  { %v451_v53 = vmul.f32 %v450_v47, %v442_v1 }
 0x245   :  { %v499_v39 = vadd.f32 0.112945676, %v498_v34  ;;  %v463_v40 = vadd.f32 1.0, %v462_v37  ;;  %v488_v43 = vadd.f32 0.05243302, %v487_v38 }
 0x246   :  { %v452_v58 = vadd.f32 1.1283791, %v451_v53 }
 0x247   :  { %v500_v12 = vmul.f32 %v499_v39, %v482_v16  ;;  %763 = vrcp.f32 %v463_v40  ;;  %v489_v49 = vmul.f32 %v488_v43, %v482_v16  ;;  %v475_v55 = vand.u32 2147483648, %v463_v40 }
 0x248   :  { %v473_v57 = vand.u32 2147483647, %v463_v40  ;;  %vm469_vm1 = vweird.f32 %v463_v40  ;;  %v453_v45 = vmul.f32 %v452_v58, %v950_v63 }
 0x249   :  { %v501_v44 = vadd.f32 0.4994258, %v500_v12  ;;  %v490_v42 = vadd.f32 0.18741608, %v489_v49  ;;  %v476_v62 = vor.u32 1.1754944e-38, %v475_v55 }
 0x24a   :  { %vm474_vm3 = vcmp.eq.f32.partialorder %v473_v57, 8.507059e+37 }
 0x24b   :  { %v502_v46 = vmul.f32 %v501_v44, %v482_v16  ;;  %v491_v60 = vmul.f32 %v490_v42, %v482_v16 }
 0x24d   :  { %v503_v50 = vadd.f32 1.0, %v502_v46  ;;  %v764_v51 = vpop.eup %763  ;;  %v492_v3 = vadd.f32 1.1283791, %v491_v60 }
 0x24e   :  { %v465_v52 = vmul.f32 %v764_v51, %v463_v40  ;;  %vm470_vm0 = vweird.f32 %v764_v51 }
 0x24f   :  { %765 = vrcp.f32 %v503_v50  ;;  %vm471_vm2 = vmor %vm469_vm1, %vm470_vm0  ;;  %v515_v5 = vand.u32 2147483648, %v503_v50  ;;  %v513_v9 = vand.u32 2147483647, %v503_v50  ;;  %vm509_vm5 = vweird.f32 %v503_v50 }
 0x250   :  { %v466_v54 = vsub.f32 1.0, %v465_v52  ;;  %v493_v14 = vmul.f32 %v492_v3, %v958_v8  ;;  %v754_v8 = vld [vmem:[%s981_s6] ss:$0 sm:$0xff] }
 0x251   :  { %v516_v11 = vor.u32 1.1754944e-38, %v515_v5  ;;  %vm514_vm7 = vcmp.eq.f32.partialorder %v513_v9, 8.507059e+37 }
 0x252   :  { %v467_v56 = vmul.f32 %v764_v51, %v466_v54 }
 0x254   :  { %v468_v61 = vadd.f32 %v764_v51, %v467_v56 }
 0x255   :  { %v766_v59 = vpop.eup %765 }
 0x256   :  { %v505_v0 = vmul.f32 %v766_v59, %v503_v50  ;;  %v472_v41 = vsel %vm471_vm2, %v764_v51, %v468_v61  ;;  %vm510_vm4 = vweird.f32 %v766_v59 }
 0x257   :  { %v477_v2 = vsel %vm474_vm3, %v476_v62, %v472_v41  ;;  %vm511_vm6 = vmor %vm509_vm5, %vm510_vm4 }
 0x258   :  { %v506_v1 = vsub.f32 1.0, %v505_v0  ;;  %v478_v6 = vmul.f32 %v477_v2, %v453_v45 }
 0x25a   :  { %v507_v7 = vmul.f32 %v766_v59, %v506_v1  ;;  %v688_v15 = vclamps-f32 %v478_v6, 1.0 }
 0x25c   :  { %v508_v10 = vadd.f32 %v766_v59, %v507_v7  ;;  %v521_v24 = vadd.f32 1.0, %v688_v15 }
 0x25e   :  { %v512_v16 = vsel %vm511_vm6, %v766_v59, %v508_v10  ;;  %v523_v23 = vmul.f32 %v521_v24, %v437_v19 }
 0x25f   :  { %v517_v18 = vsel %vm514_vm7, %v516_v11, %v512_v16 }
 0x260   :  { %v518_v17 = vmul.f32 %v517_v18, %v493_v14 }
 0x262   :  { %v689_v63 = vclamps-f32 %v518_v17, 1.0 }
 0x264   :  { %v522_v22 = vadd.f32 1.0, %v689_v63 }
 0x266   :  { %v524_v25 = vmul.f32 %v522_v22, %v438_v21 }
 0x268   :  { %v525_v26 = vpack.c.bf16 %v524_v25, %v523_v23 }
 0x26a   :  { %602 = vmatmul.bf16.vlgmr.msra.gmra.mxu3 %v525_v26 }
 0x2ed   :  { %v603_v27 = vpop.f32.mrf.mxu3 }
 0x2ee   :  { %v604_v28 = vadd.f32 %v754_v8, %v603_v27 }
 0x2f0   :  { %608 = vst [vmem:[%s982_s7] sm:$0xff] %v604_v28 }
 0x2f5   :  { %v605_v29 = vpop.f32.mrf.mxu3 }
 0x2f6   :  { %v606_v30 = vadd.f32 %v754_v8, %v605_v29 }
 0x2f8   :  { %609 = vst [vmem:[%s982_s7 + $0x8] sm:$0xff] %v606_v30 }
 0x2f9   :  { %614 = vsyncpa [#allocation3], 1 }
 0x2fa   :  { %615 = vsyncpa [#allocation5], 1 }

</bundles_post_ra>
